<compile_context>
chip_gen: v5e
topology: v5e:2x2
jax: 0.10.0
libtpu: 0.0.40
codegen_flags: <defaults>
</compile_context>

<pallas_src>
import jax
import jax.numpy as jnp
from jax.experimental import pallas as pl
from jax.experimental.pallas import tpu as pltpu


def _round_up(x, m):
    return ((x + m - 1) // m) * m


def _block_diag(w):
    """[A, din, dout] -> block-diagonal [A*din, A*dout]."""
    a, din, dout = w.shape
    eye = jnp.eye(a, dtype=w.dtype)
    return jnp.einsum("aio,ab->aibo", w, eye).reshape(a * din, a * dout)


def qnet_fused_kernel(x_ref, w1_ref, b1_ref, w2_ref, b2_ref, w3_ref, b3_ref,
                      o_ref):
    """All agents fused as block-diagonal weights; one batch tile.

    x_ref : [TB, A*n_obs]          (f32, cast to compute dtype in-kernel)
    wK_ref: block-diagonal weights (compute dtype, VMEM-resident)
    bK_ref: [1, A*out_k]           (f32)
    o_ref : [TB, A*n_act]          (f32)
    """
    x = x_ref[...].astype(w1_ref.dtype)
    z1 = jnp.dot(x, w1_ref[...],
                 preferred_element_type=jnp.float32) + b1_ref[...]
    z1 = jnp.maximum(z1, 0.0)
    z2 = jnp.dot(z1.astype(w2_ref.dtype), w2_ref[...],
                 preferred_element_type=jnp.float32) + b2_ref[...]
    z2 = jnp.maximum(z2, 0.0)
    q = jnp.dot(z2.astype(w3_ref.dtype), w3_ref[...],
                preferred_element_type=jnp.float32) + b3_ref[...]
    o_ref[...] = q.astype(o_ref.dtype)


def qnet_per_agent_kernel(x_ref, w1_ref, b1_ref, w2_ref, b2_ref, w3_ref,
                          b3_ref, o_ref):
    """Fallback for large agent counts (block-diag weights would be A^2).

    Each agent's q is stored directly into its output lane slice (no concat,
    no q_parts live ranges).
    """
    num_agents, n_obs, _ = w1_ref.shape
    n_act = w3_ref.shape[-1]

    x_all = x_ref[...]                                   # [TB, A*n_obs]
    for a in range(num_agents):                          # static, short loop
        x = x_all[:, a * n_obs:(a + 1) * n_obs].astype(w1_ref.dtype)
        z1 = jnp.dot(x, w1_ref[a],
                     preferred_element_type=jnp.float32) + b1_ref[a:a + 1, :]
        z1 = jnp.maximum(z1, 0.0)
        z2 = jnp.dot(z1.astype(w2_ref.dtype), w2_ref[a],
                     preferred_element_type=jnp.float32) + b2_ref[a:a + 1, :]
        z2 = jnp.maximum(z2, 0.0)
        q = jnp.dot(z2.astype(w3_ref.dtype), w3_ref[a],
                    preferred_element_type=jnp.float32) + b3_ref[a:a + 1, :]
        o_ref[:, a * n_act:(a + 1) * n_act] = q.astype(o_ref.dtype)


def qnet_forward(obs, params, *, max_batch_tile=512,
                 compute_dtype=jnp.bfloat16, fuse_agents_max=8):
    """obs: [B, A, n_obs] float32 -> q_values: [B, A, n_act] float32."""
    w1, b1, w2, b2, w3, b3 = params
    B, A, n_obs = obs.shape
    h1 = w1.shape[-1]
    h2 = w2.shape[-1]
    n_act = w3.shape[-1]

    # Free, contiguous reshape (agents/features flattened into lanes).
    obs2d = obs.reshape(B, A * n_obs)

    # Batch tile: full batch for tiny B; otherwise a sublane-aligned tile that
    # guarantees >= 2 grid steps (v7x megacore) and caps live intermediates.
    if B < 16:
        tb = B                      # block dims == full dims -> always legal
    else:
        tb = min(max_batch_tile, _round_up(pl.cdiv(B, 2), 8))
    grid = (pl.cdiv(B, tb),)        # no jnp.pad; partial last block is masked

    cparams = pltpu.CompilerParams(
        dimension_semantics=("parallel",),
        vmem_limit_bytes=32 * 1024 * 1024,
    )
    out_shape = jax.ShapeDtypeStruct((B, A * n_act), jnp.float32)

    if A <= fuse_agents_max:
        # Block-diagonal agent fusion (weights cast once to compute dtype).
        w1_bd = _block_diag(w1).astype(compute_dtype)
        w2_bd = _block_diag(w2).astype(compute_dtype)
        w3_bd = _block_diag(w3).astype(compute_dtype)
        b1_c = b1.reshape(1, A * h1).astype(jnp.float32)
        b2_c = b2.reshape(1, A * h2).astype(jnp.float32)
        b3_c = b3.reshape(1, A * n_act).astype(jnp.float32)

        out2d = pl.pallas_call(
            qnet_fused_kernel,
            out_shape=out_shape,
            grid_spec=pltpu.PrefetchScalarGridSpec(
                num_scalar_prefetch=0,
                grid=grid,
                in_specs=[
                    # obs: streamed per batch tile
                    pl.BlockSpec((tb, A * n_obs), lambda b: (b, 0)),
                    # weights/biases: constant index maps -> fetched once,
                    # VMEM-resident across the whole batch grid
                    pl.BlockSpec((A * n_obs, A * h1), lambda b: (0, 0)),
                    pl.BlockSpec((1, A * h1), lambda b: (0, 0)),
                    pl.BlockSpec((A * h1, A * h2), lambda b: (0, 0)),
                    pl.BlockSpec((1, A * h2), lambda b: (0, 0)),
                    pl.BlockSpec((A * h2, A * n_act), lambda b: (0, 0)),
                    pl.BlockSpec((1, A * n_act), lambda b: (0, 0)),
                ],
                out_specs=pl.BlockSpec((tb, A * n_act), lambda b: (b, 0)),
            ),
            compiler_params=cparams,
        )(obs2d, w1_bd, b1_c, w2_bd, b2_c, w3_bd, b3_c)
    else:
        # Per-agent fallback (large A): weights stay [A, in, out].
        w1_c = w1.astype(compute_dtype)
        w2_c = w2.astype(compute_dtype)
        w3_c = w3.astype(compute_dtype)

        out2d = pl.pallas_call(
            qnet_per_agent_kernel,
            out_shape=out_shape,
            grid_spec=pltpu.PrefetchScalarGridSpec(
                num_scalar_prefetch=0,
                grid=grid,
                in_specs=[
                    pl.BlockSpec((tb, A * n_obs), lambda b: (b, 0)),
                    pl.BlockSpec((A, n_obs, h1), lambda b: (0, 0, 0)),
                    pl.BlockSpec((A, h1), lambda b: (0, 0)),
                    pl.BlockSpec((A, h1, h2), lambda b: (0, 0, 0)),
                    pl.BlockSpec((A, h2), lambda b: (0, 0)),
                    pl.BlockSpec((A, h2, n_act), lambda b: (0, 0, 0)),
                    pl.BlockSpec((A, n_act), lambda b: (0, 0)),
                ],
                out_specs=pl.BlockSpec((tb, A * n_act), lambda b: (b, 0)),
            ),
            compiler_params=cparams,
        )(obs2d, w1_c, b1, w2_c, b2, w3_c, b3)

    return out2d.reshape(B, A, n_act)     # free contiguous reshape


def init_params(key, num_agents, n_obs, n_act, h1=128, h2=64):
    """Deterministic synthetic parameters (PyTorch Linear shapes, stored
    pre-transposed as [in, out] so the kernel computes x @ W + b)."""
    ks = jax.random.split(key, 6)
    w1 = jax.random.normal(ks[0], (num_agents, n_obs, h1), jnp.float32) * 0.1
    b1 = jax.random.normal(ks[1], (num_agents, h1), jnp.float32) * 0.1
    w2 = jax.random.normal(ks[2], (num_agents, h1, h2), jnp.float32) * 0.1
    b2 = jax.random.normal(ks[3], (num_agents, h2), jnp.float32) * 0.1
    w3 = jax.random.normal(ks[4], (num_agents, h2, n_act), jnp.float32) * 0.1
    b3 = jax.random.normal(ks[5], (num_agents, n_act), jnp.float32) * 0.1
    return (w1, b1, w2, b2, w3, b3)


def qnet_reference(obs, params):
    """Pure-JAX reference matching the PyTorch forward semantics."""
    w1, b1, w2, b2, w3, b3 = params
    outs = []
    for a in range(obs.shape[1]):
        x = obs[:, a, :]
        x = jnp.maximum(x @ w1[a] + b1[a], 0.0)
        x = jnp.maximum(x @ w2[a] + b2[a], 0.0)
        x = x @ w3[a] + b3[a]
        outs.append(x[:, None, :])
    return jnp.concatenate(outs, axis=1)


# TODO(synk): sample_action's epsilon-greedy host RNG / argmax is not part of
# the forward pass and is left to plain JAX outside the kernel.

if __name__ == "__main__":
    num_agents = 2
    n_obs = 16
    n_act = 8

    key = jax.random.PRNGKey(0)
    k_obs, k_params = jax.random.split(key)
    params = init_params(k_params, num_agents, n_obs, n_act)

    # --- fused block-diag path, bf16 operands (fast path) ---
    batch = 8
    obs = jax.random.normal(k_obs, (batch, num_agents, n_obs), jnp.float32)
    q = jax.block_until_ready(qnet_forward(obs, params))
    q_ref = qnet_reference(obs, params)
    assert q.shape == (batch, num_agents, n_act)
    assert jnp.allclose(q, q_ref, atol=2e-2, rtol=2e-2)

    # --- f32-operand path (tighter parity with the reference) ---
    q32 = jax.block_until_ready(
        qnet_forward(obs, params, compute_dtype=jnp.float32))
    assert jnp.allclose(q32, q_ref, atol=1e-2, rtol=1e-2)

    # --- multi-tile grid with a partial last block (no jnp.pad) ---
    batch2 = 40
    obs2 = jax.random.normal(jax.random.PRNGKey(1),
                             (batch2, num_agents, n_obs), jnp.float32)
    q2 = jax.block_until_ready(qnet_forward(obs2, params))
    q2_ref = qnet_reference(obs2, params)
    assert q2.shape == (batch2, num_agents, n_act)
    assert jnp.allclose(q2, q2_ref, atol=2e-2, rtol=2e-2)

    # --- per-agent fallback path (used for large A; forced here for coverage) ---
    qpa = jax.block_until_ready(
        qnet_forward(obs, params, fuse_agents_max=0))
    assert jnp.allclose(qpa, q_ref, atol=2e-2, rtol=2e-2)

    print("KERNEL_OK")
</pallas_src>

<mosaic_0001>
module attributes {stable_mosaic.version = 11 : i64} {
  func.func @qnet_fused_kernel(%arg0: i32, %arg1: memref<8x32xf32, #tpu.memory_space<vmem>>, %arg2: memref<32x256xbf16, #tpu.memory_space<vmem>>, %arg3: memref<1x256xf32, #tpu.memory_space<vmem>>, %arg4: memref<256x128xbf16, #tpu.memory_space<vmem>>, %arg5: memref<1x128xf32, #tpu.memory_space<vmem>>, %arg6: memref<128x16xbf16, #tpu.memory_space<vmem>>, %arg7: memref<1x16xf32, #tpu.memory_space<vmem>>, %arg8: memref<8x16xf32, #tpu.memory_space<vmem>>) attributes {dimension_semantics = [#tpu.dimension_semantics<parallel>], iteration_bounds = array<i64: 1>, scalar_prefetch = 0 : i64, scratch_operands = 0 : i64, tpu.core_type = #tpu.core_type<tc>, window_params = [{transform_indices = @transform_0, window_bounds = array<i64: 8, 32>}, {pipeline_mode = #tpu.pipeline_mode<synchronous>, transform_indices = @transform_1, window_bounds = array<i64: 32, 256>}, {pipeline_mode = #tpu.pipeline_mode<synchronous>, transform_indices = @transform_2, window_bounds = array<i64: 1, 256>}, {pipeline_mode = #tpu.pipeline_mode<synchronous>, transform_indices = @transform_3, window_bounds = array<i64: 256, 128>}, {pipeline_mode = #tpu.pipeline_mode<synchronous>, transform_indices = @transform_4, window_bounds = array<i64: 1, 128>}, {pipeline_mode = #tpu.pipeline_mode<synchronous>, transform_indices = @transform_5, window_bounds = array<i64: 128, 16>}, {pipeline_mode = #tpu.pipeline_mode<synchronous>, transform_indices = @transform_6, window_bounds = array<i64: 1, 16>}, {transform_indices = @transform_7, window_bounds = array<i64: 8, 16>}]} {
    %c0 = arith.constant 0 : index
    %c0_0 = arith.constant 0 : index
    %0 = vector.load %arg1[%c0, %c0_0] : memref<8x32xf32, #tpu.memory_space<vmem>>, vector<8x32xf32>
    %1 = arith.truncf %0 : vector<8x32xf32> to vector<8x32xbf16>
    %c0_1 = arith.constant 0 : index
    %c0_2 = arith.constant 0 : index
    %2 = vector.load %arg2[%c0_1, %c0_2] : memref<32x256xbf16, #tpu.memory_space<vmem>>, vector<32x256xbf16>
    %cst = arith.constant dense<0.000000e+00> : vector<8x256xf32>
    %3 = tpu.matmul %1, %2, %cst {dimension_numbers = #tpu.dot_dimension_numbers<[1], [0], [0], [1], [0, 0, 1, 1], [], []>} : vector<8x32xbf16>, vector<32x256xbf16>, vector<8x256xf32> -> vector<8x256xf32>
    %c0_3 = arith.constant 0 : index
    %c0_4 = arith.constant 0 : index
    %4 = vector.load %arg3[%c0_3, %c0_4] : memref<1x256xf32, #tpu.memory_space<vmem>>, vector<1x256xf32>
    %5 = vector.broadcast %4 : vector<1x256xf32> to vector<8x256xf32>
    %6 = arith.addf %3, %5 : vector<8x256xf32>
    %cst_5 = arith.constant 0.000000e+00 : f32
    %7 = vector.broadcast %cst_5 : f32 to vector<8x256xf32>
    %8 = arith.maximumf %6, %7 : vector<8x256xf32>
    %9 = arith.truncf %8 : vector<8x256xf32> to vector<8x256xbf16>
    %c0_6 = arith.constant 0 : index
    %c0_7 = arith.constant 0 : index
    %10 = vector.load %arg4[%c0_6, %c0_7] : memref<256x128xbf16, #tpu.memory_space<vmem>>, vector<256x128xbf16>
    %cst_8 = arith.constant dense<0.000000e+00> : vector<8x128xf32>
    %11 = tpu.matmul %9, %10, %cst_8 {dimension_numbers = #tpu.dot_dimension_numbers<[1], [0], [0], [1], [0, 0, 1, 1], [], []>} : vector<8x256xbf16>, vector<256x128xbf16>, vector<8x128xf32> -> vector<8x128xf32>
    %c0_9 = arith.constant 0 : index
    %c0_10 = arith.constant 0 : index
    %12 = vector.load %arg5[%c0_9, %c0_10] : memref<1x128xf32, #tpu.memory_space<vmem>>, vector<1x128xf32>
    %13 = vector.broadcast %12 : vector<1x128xf32> to vector<8x128xf32>
    %14 = arith.addf %11, %13 : vector<8x128xf32>
    %cst_11 = arith.constant 0.000000e+00 : f32
    %15 = vector.broadcast %cst_11 : f32 to vector<8x128xf32>
    %16 = arith.maximumf %14, %15 : vector<8x128xf32>
    %17 = arith.truncf %16 : vector<8x128xf32> to vector<8x128xbf16>
    %c0_12 = arith.constant 0 : index
    %c0_13 = arith.constant 0 : index
    %18 = vector.load %arg6[%c0_12, %c0_13] : memref<128x16xbf16, #tpu.memory_space<vmem>>, vector<128x16xbf16>
    %cst_14 = arith.constant dense<0.000000e+00> : vector<8x16xf32>
    %19 = tpu.matmul %17, %18, %cst_14 {dimension_numbers = #tpu.dot_dimension_numbers<[1], [0], [0], [1], [0, 0, 1, 1], [], []>} : vector<8x128xbf16>, vector<128x16xbf16>, vector<8x16xf32> -> vector<8x16xf32>
    %c0_15 = arith.constant 0 : index
    %c0_16 = arith.constant 0 : index
    %20 = vector.load %arg7[%c0_15, %c0_16] : memref<1x16xf32, #tpu.memory_space<vmem>>, vector<1x16xf32>
    %21 = vector.broadcast %20 : vector<1x16xf32> to vector<8x16xf32>
    %22 = arith.addf %19, %21 : vector<8x16xf32>
    %c0_17 = arith.constant 0 : index
    %c0_18 = arith.constant 0 : index
    %23 = vector.load %arg8[%c0_17, %c0_18] : memref<8x16xf32, #tpu.memory_space<vmem>>, vector<8x16xf32>
    tpu.vector_store %arg8[%c0_17, %c0_18], %22 {strides = array<i32>} : memref<8x16xf32, #tpu.memory_space<vmem>>, vector<8x16xf32>,
    return
  }
  func.func @transform_0(%arg0: i32) -> (i32, i32) {
    %c0_i32 = arith.constant 0 : i32
    %c0_i32_0 = arith.constant 0 : i32
    return %arg0, %c0_i32 : i32, i32
  }
  func.func @transform_1(%arg0: i32) -> (i32, i32) {
    %c0_i32 = arith.constant 0 : i32
    %c0_i32_0 = arith.constant 0 : i32
    %c0_i32_1 = arith.constant 0 : i32
    return %c0_i32, %c0_i32_0 : i32, i32
  }
  func.func @transform_2(%arg0: i32) -> (i32, i32) {
    %c0_i32 = arith.constant 0 : i32
    %c0_i32_0 = arith.constant 0 : i32
    %c0_i32_1 = arith.constant 0 : i32
    return %c0_i32, %c0_i32_0 : i32, i32
  }
  func.func @transform_3(%arg0: i32) -> (i32, i32) {
    %c0_i32 = arith.constant 0 : i32
    %c0_i32_0 = arith.constant 0 : i32
    %c0_i32_1 = arith.constant 0 : i32
    return %c0_i32, %c0_i32_0 : i32, i32
  }
  func.func @transform_4(%arg0: i32) -> (i32, i32) {
    %c0_i32 = arith.constant 0 : i32
    %c0_i32_0 = arith.constant 0 : i32
    %c0_i32_1 = arith.constant 0 : i32
    return %c0_i32, %c0_i32_0 : i32, i32
  }
  func.func @transform_5(%arg0: i32) -> (i32, i32) {
    %c0_i32 = arith.constant 0 : i32
    %c0_i32_0 = arith.constant 0 : i32
    %c0_i32_1 = arith.constant 0 : i32
    return %c0_i32, %c0_i32_0 : i32, i32
  }
  func.func @transform_6(%arg0: i32) -> (i32, i32) {
    %c0_i32 = arith.constant 0 : i32
    %c0_i32_0 = arith.constant 0 : i32
    %c0_i32_1 = arith.constant 0 : i32
    return %c0_i32, %c0_i32_0 : i32, i32
  }
  func.func @transform_7(%arg0: i32) -> (i32, i32) {
    %c0_i32 = arith.constant 0 : i32
    %c0_i32_0 = arith.constant 0 : i32
    return %arg0, %c0_i32 : i32, i32
  }
}

</mosaic_0001>

<bundles_post_ra>
// kernel: tpu_custom_call.1
= control target key start
LH: loop header
LB: loop body
LE: loop exit
PB: predicated region body
PF: predicated region fallthrough
CT: control target
= control target key end

     0   :  { %12 = vsyncpa [#allocation3], 0  ;;  %s680_s0 = inlined_call_operand.vmem [shape: f32[8,32], index: 0, kind: input, shape index: {}]   ;;  %s681_s1 = inlined_call_operand.vmem [shape: bf16[32,256], index: 1, kind: input, shape index: {}]   ;;  %s682_s2 = inlined_call_operand.vmem [shape: f32[1,256], index: 2, kind: input, shape index: {}]   ;;  %s683_s3 = inlined_call_operand.hbm [shape: bf16[256,128], index: 3, kind: input, shape index: {}]   ;;  %s684_s4 = inlined_call_operand.vmem [shape: f32[1,128], index: 4, kind: input, shape index: {}]   ;;  %s685_s5 = inlined_call_operand.vmem [shape: bf16[128,16], index: 5, kind: input, shape index: {}]   ;;  %s686_s6 = inlined_call_operand.vmem [shape: f32[1,16], index: 6, kind: input, shape index: {}]   ;;  %s687_s7 = inlined_call_operand.hbm [shape: f32[8,16], index: 7, kind: output, shape index: {}]  }
   0x1   :  { %13 = vsyncpa [#allocation4], 0  ;;  %s24_s26 = sshll.u32 %s683_s3, 4  ;;  %s570_s27 = smov [#allocation2]   ;;  %s25_s26 = int_to_ptr.hbm [resolvable:$true] %s24_s26 }
   0x2   :  { %s26_s28 = sshll.u32 %s570_s27, 4  ;;  %s571_s29 = smov 64   ;;  %s27_s28 = int_to_ptr.vmem [resolvable:$true] %s26_s28 }
   0x3   :  { %s572_s30 = smov 4  }
   0x4   :  { %32 = dma.hbm_to_vmem [thread:$0]  %s25_s26, 2048, %s27_s28, [#allocation3], %s571_s29, %s571_s29, %s572_s30  }
   0x5   :  { %566 = dma.done.wait [#allocation3], 2048  }
   0x6   :  { %567 = vsyncadd [#allocation3], 4294965248  ;;  %v380_v0 = vld [vmem:[%s681_s1 + $0x10] sm:$0xf]  ;;  %v487_v1 = vld [vmem:[%s681_s1 + $0x14] sm:$0xf0] }
   0x7   :  { %v372_v2 = vld [vmem:[%s681_s1] sm:$0xf]  ;;  %v381_v3 = vor.u32 %v487_v1, %v380_v0  ;;  %v485_v4 = vld [vmem:[%s681_s1 + $0x4] sm:$0xf0]  ;;  %v486_v5 = vld [vmem:[%s681_s1 + $0x14] sm:$0xf] }
   0x8   :  { %v382_v6 = vld [vmem:[%s681_s1 + $0x18] sm:$0xf0]  ;;  %v373_v7 = vor.u32 %v485_v4, %v372_v2  ;;  %v44_v8 = vld [vmem:[%s680_s0] sm:$0xff]  ;;  %v374_v13 = vld [vmem:[%s681_s1 + $0x8] sm:$0xf0]  ;;  %vm76_vm0 = vcmask 261120  }
   0x9   :  { %86 = vmatpush.bf16.msra.mxu1 %v381_v3  ;;  %v495_v9 = vld [vmem:[#allocation2 + $0x38] sm:$0xff]  ;;  %v385_v10 = vor.u32 %v486_v5, %v382_v6  ;;  %v484_v12 = vld [vmem:[%s681_s1 + $0x4] sm:$0xf]  ;;  %v494_v14 = vld [vmem:[#allocation2 + $0x30] sm:$0xff]  ;;  %v45_v15 = vpack.c.bf16 %v44_v8, %v44_v8  ;;  %s573_s20 = smov [#allocation5]   ;;  %s360_s23 = sshll.u32 %s687_s7, 4  ;;  %s361_s23 = int_to_ptr.hbm [resolvable:$true] %s360_s23 }
   0xa   :  { %v503_v11 = vld [vmem:[#allocation2 + $0x78] sm:$0xff]  ;;  %242 = vmatpush.bf16.msra.mxu2 %v495_v9  ;;  %v502_v16 = vld [vmem:[#allocation2 + $0x70] sm:$0xff]  ;;  %v377_v17 = vor.u32 %v484_v12, %v374_v13  ;;  %v493_v18 = vld [vmem:[#allocation2 + $0x28] sm:$0xff]  ;;  %vm351_vm1 = vcmask 130048  }
   0xb   :  { %255 = vmatpush.bf16.msra.mxu3 %v503_v11  ;;  %v492_v19 = vld [vmem:[#allocation2 + $0x20] sm:$0xff]  ;;  %v491_v20 = vld [vmem:[#allocation2 + $0x18] sm:$0xff]  ;;  %v490_v21 = vld [vmem:[#allocation2 + $0x10] sm:$0xff] }
   0xc   :  { %v489_v22 = vld [vmem:[#allocation2 + $0x8] sm:$0xff]  ;;  %v488_v24 = vld [vmem:[#allocation2] sm:$0xff]  ;;  %v499_v26 = vld [vmem:[#allocation2 + $0x58] sm:$0xff] }
   0xd   :  { %87 = vmatpush.bf16.msra.mxu1 %v373_v7  ;;  %v501_v23 = vld [vmem:[#allocation2 + $0x68] sm:$0xff]  ;;  %v500_v25 = vld [vmem:[#allocation2 + $0x60] sm:$0xff]  ;;  %v498_v27 = vld [vmem:[#allocation2 + $0x50] sm:$0xff] }
   0xe   :  { %243 = vmatpush.bf16.msra.mxu2 %v494_v14  ;;  %v497_v28 = vld [vmem:[#allocation2 + $0x48] sm:$0xff]  ;;  %v496_v29 = vld [vmem:[#allocation2 + $0x40] sm:$0xff]  ;;  %v511_v30 = vld [vmem:[%s685_s5 + $0x38] sm:$0xff] }
   0xf   :  { %256 = vmatpush.bf16.msra.mxu3 %v502_v16  ;;  %v50_v31 = vld [vmem:[%s682_s2] sm:$0x3]  ;;  %338 = vmatpush.bf16.msra.mxu0 %v511_v30  ;;  %v510_v32 = vld [vmem:[%s685_s5 + $0x30] sm:$0xff]  ;;  %v509_v45 = vld [vmem:[%s685_s5 + $0x28] sm:$0xff] }
  0x10   :  { %386 = vmatmul.msk.bf16.vlgmr.msra.gmra.mxu1 %vm76_vm0, %v45_v15  ;;  %v52_v33 = vperm.slane %v50_v31, 0  ;;  %v53_v39 = vperm.slane %v50_v31, 1  ;;  %v508_v46 = vld [vmem:[%s685_s5 + $0x20] sm:$0xff]  ;;  %v507_v47 = vld [vmem:[%s685_s5 + $0x18] sm:$0xff]  ;;  %v506_v48 = vld [vmem:[%s685_s5 + $0x10] sm:$0xff] }
  0x11   :  { %99 = vmatpush.bf16.msrb.mxu1 %v385_v10  ;;  %v505_v49 = vld [vmem:[%s685_s5 + $0x8] sm:$0xff]  ;;  %v504_v50 = vld [vmem:[%s685_s5] sm:$0xff]  ;;  %s358_s5 = sshll.u32 %s573_s20, 4  ;;  %s359_s5 = int_to_ptr.vmem [resolvable:$true] %s358_s5 }
  0x12   :  { %244 = vmatpush.bf16.msra.mxu2 %v493_v18  ;;  %v516_v53 = vld [vmem:[%s684_s4] ss:$0 sm:$0xff] }
  0x13   :  { %257 = vmatpush.bf16.msra.mxu3 %v501_v23  ;;  %339 = vmatpush.bf16.msra.mxu0 %v510_v32  ;;  %v517_v60 = vld [vmem:[%s686_s6] ss:$0 sm:$0xff] }
  0x15   :  { %100 = vmatpush.bf16.msrb.mxu1 %v377_v17 }
  0x16   :  { %245 = vmatpush.bf16.msra.mxu2 %v492_v19 }
  0x17   :  { %258 = vmatpush.bf16.msra.mxu3 %v500_v25  ;;  %340 = vmatpush.bf16.msra.mxu0 %v509_v45 }
  0x1a   :  { %246 = vmatpush.bf16.msra.mxu2 %v491_v20 }
  0x1b   :  { %259 = vmatpush.bf16.msra.mxu3 %v499_v26  ;;  %341 = vmatpush.bf16.msra.mxu0 %v508_v46 }
  0x1e   :  { %247 = vmatpush.bf16.msra.mxu2 %v490_v21 }
  0x1f   :  { %260 = vmatpush.bf16.msra.mxu3 %v498_v27  ;;  %342 = vmatpush.bf16.msra.mxu0 %v507_v47 }
  0x20   :  { %387 = vmatmul.msk.bf16.vlgmr.msrb.gmra.mxu1 %vm76_vm0, %v45_v15 }
  0x22   :  { %248 = vmatpush.bf16.msra.mxu2 %v489_v22 }
  0x23   :  { %261 = vmatpush.bf16.msra.mxu3 %v497_v28  ;;  %343 = vmatpush.bf16.msra.mxu0 %v506_v48 }
  0x26   :  { %249 = vmatpush.bf16.msra.mxu2 %v488_v24 }
  0x27   :  { %262 = vmatpush.bf16.msra.mxu3 %v496_v29  ;;  %344 = vmatpush.bf16.msra.mxu0 %v505_v49 }
  0x2b   :  { %345 = vmatpush.bf16.msra.mxu0 %v504_v50 }
  0x8d   :  { %v89_v34 = vpop.f32.mrf.mxu1 }
  0x8e   :  { %v90_v35 = vadd.f32 %v89_v34, %v52_v33 }
  0x90   :  { %v106_v36 = vmax.f32 %v90_v35, 0.0 }
  0x92   :  { %v108_v37 = vpack.c.bf16 %v106_v36, %v106_v36 }
  0x94   :  { %250 = vmatmul.bf16.vlgmr.msra.gmra.mxu2 %v108_v37 }
  0x95   :  { %v91_v38 = vpop.f32.mrf.mxu1 }
  0x9d   :  { %v102_v40 = vpop.f32.mrf.mxu1 }
  0x9e   :  { %v103_v41 = vadd.f32 %v102_v40, %v53_v39 }
  0xa0   :  { %v107_v42 = vmax.f32 %v103_v41, 0.0 }
  0xa2   :  { %v109_v43 = vpack.c.bf16 %v107_v42, %v107_v42 }
  0xa4   :  { %263 = vmatmul.bf16.vlgmr.msra.gmra.mxu3 %v109_v43 }
  0xa5   :  { %v104_v44 = vpop.f32.mrf.mxu1 }
 0x117   :  { %v251_v51 = vpop.f32.mrf.mxu2 }
 0x118   :  { %v252_v54 = vadd.f32 %v516_v53, %v251_v51 }
 0x11f   :  { %v253_v52 = vpop.f32.mrf.mxu2 }
 0x127   :  { %v264_v55 = vpop.f32.mrf.mxu3 }
 0x128   :  { %v265_v56 = vadd.f32 %v264_v55, %v252_v54 }
 0x12a   :  { %v268_v57 = vmax.f32 %v265_v56, 0.0 }
 0x12c   :  { %v269_v58 = vpack.c.bf16 %v268_v57, %v268_v57 }
 0x12e   :  { %346 = vmatmul.bf16.vlgmr.msra.gmra.mxu0 %v269_v58 }
 0x12f   :  { %v266_v59 = vpop.f32.mrf.mxu3 }
 0x1ab   :  { %v347_v61 = vpop.f32.mrf.mxu0 }
 0x1ac   :  { %v348_v62 = vadd.f32 %v517_v60, %v347_v61 }
 0x1ae   :  { %352 = vst.msk [vmem:[#allocation5] sm:$0xff] %vm351_vm1, %v348_v62 }
 0x1af   :  { %363 = dma.vmem_to_hbm [thread:$0]  %s359_s5, 128, %s361_s23, [#allocation4]  }
 0x1b3   :  { %v349_v63 = vpop.f32.mrf.mxu0 }
 0x1b4   :  { %568 = dma.done.wait [#allocation4], 128  }
 0x1b5   :  { %569 = vsyncadd [#allocation4], 4294967168 }
 0x1b6   :  { %368 = vsyncpa [#allocation3], 1 }
 0x1b7   :  { %369 = vsyncpa [#allocation4], 1 }

</bundles_post_ra>
